<compile_context>
chip_gen: v7x
topology: tpu7x:2x2x1
jax: 0.10.0
libtpu: 0.0.40
codegen_flags: <defaults>
</compile_context>

<pallas_src>
import functools
import math

import jax
import jax.numpy as jnp
from jax import lax
from jax.experimental import pallas as pl
from jax.experimental.pallas import tpu as pltpu


def _round_up(x, m):
    return (x + m - 1) // m * m


def _pick_block(d, itemsize, budget_bytes=20 * 1024 * 1024):
    """Largest of {256, 128} whose working set fits a conservative VMEM budget."""
    for blk in (256, 128):
        # anchor + candidate feature tiles (double-buffered) + f32 gram/dist2 tile
        vmem = 2 * 2 * blk * d * itemsize + 2 * blk * blk * 4
        if vmem <= budget_bytes:
            return blk
    return 128


def _triplet_kernel(xr_ref, xc_ref, sqr_ref, sqc_ref, tr_ref, tc_ref, out_ref,
                    mx_ref, mn_ref, *, margin, n_valid, block_n):
    """Grid = (row_tiles, col_tiles); the column axis is the streamed reduction."""
    j = pl.program_id(1)

    @pl.when(j == 0)
    def _init():
        mx_ref[...] = jnp.full(mx_ref.shape, -jnp.inf, jnp.float32)
        mn_ref[...] = jnp.full(mn_ref.shape, jnp.inf, jnp.float32)

    # gram_t[c, r] = x_c . x_r  — candidates on sublanes, anchors on lanes.
    # Native-dtype operands (bf16/f32) with f32 accumulation on the MXU.
    gram_t = lax.dot_general(
        xc_ref[...], xr_ref[...], (((1,), (1,)), ((), ())),
        preferred_element_type=jnp.float32)                         # (tn, tm)

    # Squared pairwise distances for this tile (f32, sqrt deferred).
    dist2 = (sqc_ref[...] + sqr_ref[...]) - 2.0 * gram_t            # (tn, tm)

    same = tc_ref[...] == tr_ref[...]                               # (tn, tm) bool
    if n_valid is not None:
        # Exclude zero-padded candidate rows (only traced when padding exists).
        col_ok = (j * block_n
                  + lax.broadcasted_iota(jnp.int32, same.shape, 0)) < n_valid
        pos_mask = jnp.logical_and(same, col_ok)
        neg_mask = jnp.logical_and(jnp.logical_not(same), col_ok)
    else:
        pos_mask = same
        neg_mask = jnp.logical_not(same)

    # Online hard mining on *squared* distances (sqrt/clamp are monotone, so
    # max/min commute with them — apply them once per anchor at finalize).
    mx_ref[...] = jnp.maximum(
        mx_ref[...],
        jnp.max(jnp.where(pos_mask, dist2, -jnp.inf), axis=0, keepdims=True))
    mn_ref[...] = jnp.minimum(
        mn_ref[...],
        jnp.min(jnp.where(neg_mask, dist2, jnp.inf), axis=0, keepdims=True))

    @pl.when(j == pl.num_programs(1) - 1)
    def _finalize():
        dist_ap = jnp.sqrt(jnp.maximum(mx_ref[...], 1e-12))         # (1, tm)
        dist_an = jnp.sqrt(jnp.maximum(mn_ref[...], 1e-12))         # (1, tm)
        # Row with no opposite-label sample -> dist_an = +inf -> contributes 0.
        out_ref[...] = jnp.maximum(dist_ap - dist_an + jnp.float32(margin), 0.0)


def batch_triplet_loss(inputs, targets, margin=0.3, block_m=None, block_n=None):
    """inputs: (N, D) float features, targets: (N,) int labels -> scalar f32 loss.

    block_m/block_n: anchor / candidate tile sizes. Default (None) auto-picks
    256 when it fits the VMEM budget (saturates the 256x256 MXU on v6e/v7x),
    otherwise 128, which works on every TPU generation.
    """
    n, d = inputs.shape
    x = inputs
    if x.dtype not in (jnp.float32, jnp.bfloat16):
        x = x.astype(jnp.float32)          # keep bf16/f32 native for the MXU
    t = targets.reshape(n).astype(jnp.int32)

    auto = _pick_block(d, x.dtype.itemsize)
    block_m = auto if block_m is None else block_m
    block_n = auto if block_n is None else block_n

    if n <= block_m:
        tm = tn = _round_up(n, 8)          # single anchor tile fits in VMEM
        n_pad = tm
    else:
        tm, tn = block_m, block_n
        n_pad = _round_up(n, (tm * tn) // math.gcd(tm, tn))

    if n_pad != n:
        x = jnp.pad(x, ((0, n_pad - n), (0, 0)))
        t = jnp.pad(t, (0, n_pad - n), constant_values=-1)
        n_valid = n
    else:
        n_valid = None

    # Squared norms computed once (O(N*D)) and fed in both layouts so the
    # kernel never needs an in-kernel transpose of a norm/label vector.
    sq = jnp.sum(jnp.square(x.astype(jnp.float32)), axis=1)         # (n_pad,)
    sq_row, sq_col = sq.reshape(1, n_pad), sq.reshape(n_pad, 1)
    t_row, t_col = t.reshape(1, n_pad), t.reshape(n_pad, 1)

    grid = (n_pad // tm, n_pad // tn)
    kernel = functools.partial(
        _triplet_kernel, margin=float(margin), n_valid=n_valid, block_n=tn)

    # TODO(synk): also stream the feature dim if (tm + tn) * D tiles ever
    # outgrow the VMEM budget (typical re-id feature dims are fine).
    per_sample = pl.pallas_call(
        kernel,
        out_shape=jax.ShapeDtypeStruct((1, n_pad), jnp.float32),
        grid=grid,
        in_specs=[
            pl.BlockSpec((tm, d), lambda i, j: (i, 0)),   # anchor features (resident per i)
            pl.BlockSpec((tn, d), lambda i, j: (j, 0)),   # candidate features (streamed)
            pl.BlockSpec((1, tm), lambda i, j: (0, i)),   # anchor ||x||^2 (lane-dense)
            pl.BlockSpec((tn, 1), lambda i, j: (j, 0)),   # candidate ||x||^2
            pl.BlockSpec((1, tm), lambda i, j: (0, i)),   # anchor labels (lane-dense)
            pl.BlockSpec((tn, 1), lambda i, j: (j, 0)),   # candidate labels
        ],
        out_specs=pl.BlockSpec((1, tm), lambda i, j: (0, i)),
        scratch_shapes=[
            pltpu.VMEM((1, tm), jnp.float32),   # running max dist2 over positives
            pltpu.VMEM((1, tm), jnp.float32),   # running min dist2 over negatives
        ],
        compiler_params=pltpu.CompilerParams(
            dimension_semantics=("parallel", "arbitrary"),
            vmem_limit_bytes=32 * 1024 * 1024,
        ),
    )(x, x, sq_row, sq_col, t_row, t_col)

    return jnp.mean(per_sample[0, :n])


def _reference_loss(inputs, targets, margin=0.3):
    """Pure-JAX mirror of the PyTorch forward (sqrt before the reductions)."""
    x = inputs.astype(jnp.float32)
    sq = jnp.sum(x * x, axis=1, keepdims=True)
    gram = jnp.dot(x, x.T, preferred_element_type=jnp.float32)
    dist = jnp.sqrt(jnp.maximum(sq + sq.T - 2.0 * gram, 1e-12))
    mask = targets[:, None] == targets[None, :]
    dist_ap = jnp.max(jnp.where(mask, dist, -jnp.inf), axis=1)
    dist_an = jnp.min(jnp.where(mask, jnp.inf, dist), axis=1)
    return jnp.mean(jnp.maximum(dist_ap - dist_an + margin, 0.0))


if __name__ == "__main__":
    root = jax.random.PRNGKey(0)

    def check(n, d, dtype, num_classes, tol, block_m=None, block_n=None):
        kx, kt = jax.random.split(jax.random.fold_in(root, n * 10007 + d))
        x = jax.random.normal(kx, (n, d), dtype=jnp.float32).astype(dtype)
        t = jax.random.randint(kt, (n,), 0, num_classes, dtype=jnp.int32)
        got = jax.block_until_ready(
            batch_triplet_loss(x, t, margin=0.3, block_m=block_m, block_n=block_n))
        ref = jax.block_until_ready(_reference_loss(x, t, margin=0.3))
        assert bool(jnp.isfinite(got)), (n, d, str(dtype), got)
        assert jnp.allclose(got, ref, rtol=tol, atol=tol), (n, d, str(dtype), got, ref)

    # Small single-tile path (original demo size).
    check(8, 128, jnp.float32, num_classes=4, tol=1e-4)
    # Auto tile-size path (single 256-wide tile on the MXU).
    check(256, 128, jnp.float32, num_classes=16, tol=1e-4)
    # Tiled path: forced 128 tiles -> grid (2, 2) streamed candidate tiles.
    check(256, 128, jnp.float32, num_classes=16, tol=1e-4, block_m=128, block_n=128)
    # Padded path: N not a multiple of the tile, non-128 feature dim.
    check(200, 64, jnp.float32, num_classes=10, tol=1e-4)
    # Padded + tiled path together.
    check(300, 64, jnp.float32, num_classes=12, tol=1e-4, block_m=128, block_n=128)
    # Native-bf16 features on the MXU (f32 accumulation).
    check(256, 128, jnp.bfloat16, num_classes=16, tol=2e-3)

    print("KERNEL_OK")
</pallas_src>

<mosaic_0001>
module attributes {stable_mosaic.version = 11 : i64} {
  func.func @_triplet_kernel(%arg0: i32, %arg1: i32, %arg2: memref<8x128xf32, #tpu.memory_space<vmem>>, %arg3: memref<8x128xf32, #tpu.memory_space<vmem>>, %arg4: memref<1x8xf32, #tpu.memory_space<vmem>>, %arg5: memref<8x1xf32, #tpu.memory_space<vmem>>, %arg6: memref<1x8xi32, #tpu.memory_space<vmem>>, %arg7: memref<8x1xi32, #tpu.memory_space<vmem>>, %arg8: memref<1x8xf32, #tpu.memory_space<vmem>>, %arg9: memref<1x8xf32, #tpu.memory_space<vmem>>, %arg10: memref<1x8xf32, #tpu.memory_space<vmem>>) attributes {dimension_semantics = [#tpu.dimension_semantics<parallel>, #tpu.dimension_semantics<arbitrary>], iteration_bounds = array<i64: 1, 1>, scalar_prefetch = 0 : i64, scratch_operands = 2 : i64, tpu.core_type = #tpu.core_type<tc>, window_params = [{transform_indices = @transform_0, window_bounds = array<i64: 8, 128>}, {transform_indices = @transform_1, window_bounds = array<i64: 8, 128>}, {transform_indices = @transform_2, window_bounds = array<i64: 1, 8>}, {transform_indices = @transform_3, window_bounds = array<i64: 8, 1>}, {transform_indices = @transform_4, window_bounds = array<i64: 1, 8>}, {transform_indices = @transform_5, window_bounds = array<i64: 8, 1>}, {transform_indices = @transform_6, window_bounds = array<i64: 1, 8>}]} {
    %c0_i32 = arith.constant 0 : i32
    %0 = arith.cmpi eq, %arg1, %c0_i32 : i32
    %1 = arith.extui %0 : i1 to i32
    %c0_i32_0 = arith.constant 0 : i32
    %2 = arith.cmpi ne, %1, %c0_i32_0 : i32
    scf.if %2 {
      %cst_28 = arith.constant 0xFF800000 : f32
      %37 = vector.broadcast %cst_28 : f32 to vector<1x8xf32>
      %c0_29 = arith.constant 0 : index
      %c0_30 = arith.constant 0 : index
      %38 = vector.load %arg9[%c0_29, %c0_30] : memref<1x8xf32, #tpu.memory_space<vmem>>, vector<1x8xf32>
      tpu.vector_store %arg9[%c0_29, %c0_30], %37 {strides = array<i32>} : memref<1x8xf32, #tpu.memory_space<vmem>>, vector<1x8xf32>,
      %cst_31 = arith.constant 0x7F800000 : f32
      %39 = vector.broadcast %cst_31 : f32 to vector<1x8xf32>
      %c0_32 = arith.constant 0 : index
      %c0_33 = arith.constant 0 : index
      %40 = vector.load %arg10[%c0_32, %c0_33] : memref<1x8xf32, #tpu.memory_space<vmem>>, vector<1x8xf32>
      tpu.vector_store %arg10[%c0_32, %c0_33], %39 {strides = array<i32>} : memref<1x8xf32, #tpu.memory_space<vmem>>, vector<1x8xf32>,
    } else {
    }
    %c0 = arith.constant 0 : index
    %c0_1 = arith.constant 0 : index
    %3 = vector.load %arg3[%c0, %c0_1] : memref<8x128xf32, #tpu.memory_space<vmem>>, vector<8x128xf32>
    %c0_2 = arith.constant 0 : index
    %c0_3 = arith.constant 0 : index
    %4 = vector.load %arg2[%c0_2, %c0_3] : memref<8x128xf32, #tpu.memory_space<vmem>>, vector<8x128xf32>
    %cst = arith.constant dense<0.000000e+00> : vector<8x8xf32>
    %5 = tpu.matmul %3, %4, %cst {dimension_numbers = #tpu.dot_dimension_numbers<[1], [1], [0], [0], [0, 0, 1, 0], [], []>} : vector<8x128xf32>, vector<8x128xf32>, vector<8x8xf32> -> vector<8x8xf32>
    %c0_4 = arith.constant 0 : index
    %c0_5 = arith.constant 0 : index
    %6 = vector.load %arg5[%c0_4, %c0_5] : memref<8x1xf32, #tpu.memory_space<vmem>>, vector<8x1xf32>
    %c0_6 = arith.constant 0 : index
    %c0_7 = arith.constant 0 : index
    %7 = vector.load %arg4[%c0_6, %c0_7] : memref<1x8xf32, #tpu.memory_space<vmem>>, vector<1x8xf32>
    %8 = vector.broadcast %6 : vector<8x1xf32> to vector<8x8xf32>
    %9 = vector.broadcast %7 : vector<1x8xf32> to vector<8x8xf32>
    %10 = arith.addf %8, %9 : vector<8x8xf32>
    %cst_8 = arith.constant 2.000000e+00 : f32
    %11 = vector.broadcast %cst_8 : f32 to vector<8x8xf32>
    %12 = arith.mulf %11, %5 : vector<8x8xf32>
    %13 = arith.subf %10, %12 : vector<8x8xf32>
    %c0_9 = arith.constant 0 : index
    %c0_10 = arith.constant 0 : index
    %14 = vector.load %arg7[%c0_9, %c0_10] : memref<8x1xi32, #tpu.memory_space<vmem>>, vector<8x1xi32>
    %c0_11 = arith.constant 0 : index
    %c0_12 = arith.constant 0 : index
    %15 = vector.load %arg6[%c0_11, %c0_12] : memref<1x8xi32, #tpu.memory_space<vmem>>, vector<1x8xi32>
    %16 = vector.broadcast %14 : vector<8x1xi32> to vector<8x8xi32>
    %17 = vector.broadcast %15 : vector<1x8xi32> to vector<8x8xi32>
    %18 = arith.cmpi eq, %16, %17 : vector<8x8xi32>
    %cst_13 = arith.constant dense<true> : vector<8x8xi1>
    %19 = arith.xori %18, %cst_13 : vector<8x8xi1>
    %c0_14 = arith.constant 0 : index
    %c0_15 = arith.constant 0 : index
    %20 = vector.load %arg9[%c0_14, %c0_15] : memref<1x8xf32, #tpu.memory_space<vmem>>, vector<1x8xf32>
    %cst_16 = arith.constant 0xFF800000 : f32
    %21 = vector.broadcast %cst_16 : f32 to vector<8x8xf32>
    %22 = arith.select %18, %13, %21 : vector<8x8xi1>, vector<8x8xf32>
    %cst_17 = arith.constant dense<0xFF800000> : vector<8xf32>
    %23 = vector.multi_reduction <maximumf>, %22, %cst_17 [0] : vector<8x8xf32> to vector<8xf32>
    %24 = vector.shape_cast %23 : vector<8xf32> to vector<1x8xf32>
    %25 = arith.maximumf %20, %24 : vector<1x8xf32>
    %c0_18 = arith.constant 0 : index
    %c0_19 = arith.constant 0 : index
    %26 = vector.load %arg9[%c0_18, %c0_19] : memref<1x8xf32, #tpu.memory_space<vmem>>, vector<1x8xf32>
    tpu.vector_store %arg9[%c0_18, %c0_19], %25 {strides = array<i32>} : memref<1x8xf32, #tpu.memory_space<vmem>>, vector<1x8xf32>,
    %c0_20 = arith.constant 0 : index
    %c0_21 = arith.constant 0 : index
    %27 = vector.load %arg10[%c0_20, %c0_21] : memref<1x8xf32, #tpu.memory_space<vmem>>, vector<1x8xf32>
    %cst_22 = arith.constant 0x7F800000 : f32
    %28 = vector.broadcast %cst_22 : f32 to vector<8x8xf32>
    %29 = arith.select %19, %13, %28 : vector<8x8xi1>, vector<8x8xf32>
    %cst_23 = arith.constant dense<0x7F800000> : vector<8xf32>
    %30 = vector.multi_reduction <minimumf>, %29, %cst_23 [0] : vector<8x8xf32> to vector<8xf32>
    %31 = vector.shape_cast %30 : vector<8xf32> to vector<1x8xf32>
    %32 = arith.minimumf %27, %31 : vector<1x8xf32>
    %c0_24 = arith.constant 0 : index
    %c0_25 = arith.constant 0 : index
    %33 = vector.load %arg10[%c0_24, %c0_25] : memref<1x8xf32, #tpu.memory_space<vmem>>, vector<1x8xf32>
    tpu.vector_store %arg10[%c0_24, %c0_25], %32 {strides = array<i32>} : memref<1x8xf32, #tpu.memory_space<vmem>>, vector<1x8xf32>,
    %c0_i32_26 = arith.constant 0 : i32
    %34 = arith.cmpi eq, %arg1, %c0_i32_26 : i32
    %35 = arith.extui %34 : i1 to i32
    %c0_i32_27 = arith.constant 0 : i32
    %36 = arith.cmpi ne, %35, %c0_i32_27 : i32
    scf.if %36 {
      %c0_28 = arith.constant 0 : index
      %c0_29 = arith.constant 0 : index
      %37 = vector.load %arg9[%c0_28, %c0_29] : memref<1x8xf32, #tpu.memory_space<vmem>>, vector<1x8xf32>
      %cst_30 = arith.constant 9.99999996E-13 : f32
      %38 = vector.broadcast %cst_30 : f32 to vector<1x8xf32>
      %39 = arith.maximumf %37, %38 : vector<1x8xf32>
      %40 = math.sqrt %39 : vector<1x8xf32>
      %c0_31 = arith.constant 0 : index
      %c0_32 = arith.constant 0 : index
      %41 = vector.load %arg10[%c0_31, %c0_32] : memref<1x8xf32, #tpu.memory_space<vmem>>, vector<1x8xf32>
      %cst_33 = arith.constant 9.99999996E-13 : f32
      %42 = vector.broadcast %cst_33 : f32 to vector<1x8xf32>
      %43 = arith.maximumf %41, %42 : vector<1x8xf32>
      %44 = math.sqrt %43 : vector<1x8xf32>
      %45 = arith.subf %40, %44 : vector<1x8xf32>
      %cst_34 = arith.constant 3.000000e-01 : f32
      %46 = vector.broadcast %cst_34 : f32 to vector<1x8xf32>
      %47 = arith.addf %45, %46 : vector<1x8xf32>
      %cst_35 = arith.constant 0.000000e+00 : f32
      %48 = vector.broadcast %cst_35 : f32 to vector<1x8xf32>
      %49 = arith.maximumf %47, %48 : vector<1x8xf32>
      %c0_36 = arith.constant 0 : index
      %c0_37 = arith.constant 0 : index
      %50 = vector.load %arg8[%c0_36, %c0_37] : memref<1x8xf32, #tpu.memory_space<vmem>>, vector<1x8xf32>
      tpu.vector_store %arg8[%c0_36, %c0_37], %49 {strides = array<i32>} : memref<1x8xf32, #tpu.memory_space<vmem>>, vector<1x8xf32>,
    } else {
    }
    return
  }
  func.func @transform_0(%arg0: i32, %arg1: i32) -> (i32, i32) {
    %c0_i32 = arith.constant 0 : i32
    %c0_i32_0 = arith.constant 0 : i32
    return %arg0, %c0_i32 : i32, i32
  }
  func.func @transform_1(%arg0: i32, %arg1: i32) -> (i32, i32) {
    %c0_i32 = arith.constant 0 : i32
    %c0_i32_0 = arith.constant 0 : i32
    return %arg1, %c0_i32 : i32, i32
  }
  func.func @transform_2(%arg0: i32, %arg1: i32) -> (i32, i32) {
    %c0_i32 = arith.constant 0 : i32
    %c0_i32_0 = arith.constant 0 : i32
    return %c0_i32, %arg0 : i32, i32
  }
  func.func @transform_3(%arg0: i32, %arg1: i32) -> (i32, i32) {
    %c0_i32 = arith.constant 0 : i32
    %c0_i32_0 = arith.constant 0 : i32
    return %arg1, %c0_i32 : i32, i32
  }
  func.func @transform_4(%arg0: i32, %arg1: i32) -> (i32, i32) {
    %c0_i32 = arith.constant 0 : i32
    %c0_i32_0 = arith.constant 0 : i32
    return %c0_i32, %arg0 : i32, i32
  }
  func.func @transform_5(%arg0: i32, %arg1: i32) -> (i32, i32) {
    %c0_i32 = arith.constant 0 : i32
    %c0_i32_0 = arith.constant 0 : i32
    return %arg1, %c0_i32 : i32, i32
  }
  func.func @transform_6(%arg0: i32, %arg1: i32) -> (i32, i32) {
    %c0_i32 = arith.constant 0 : i32
    %c0_i32_0 = arith.constant 0 : i32
    return %c0_i32, %arg0 : i32, i32
  }
}

</mosaic_0001>

<bundles_post_ra>
// kernel: tpu_custom_call.1
= control target key start
LH: loop header
LB: loop body
LE: loop exit
PB: predicated region body
PF: predicated region fallthrough
CT: control target
= control target key end

     0   :  { %v238_v2 = vmov 0.0   ;;  %vm239_vm0 = vmmov 0   ;;  %s315_s0 = inlined_call_operand.vmem [shape: f32[8,128], index: 0, kind: input, shape index: {}]   ;;  %s316_s1 = inlined_call_operand.vmem [shape: f32[8,128], index: 1, kind: input, shape index: {}]   ;;  %s317_s2 = inlined_call_operand.vmem [shape: f32[1,8], index: 2, kind: input, shape index: {}]   ;;  %s318_s3 = inlined_call_operand.vmem [shape: f32[8,1], index: 3, kind: input, shape index: {}]   ;;  %s319_s4 = inlined_call_operand.vmem [shape: s32[1,8], index: 4, kind: input, shape index: {}]   ;;  %s320_s5 = inlined_call_operand.vmem [shape: s32[8,1], index: 5, kind: input, shape index: {}]   ;;  %s321_s6 = inlined_call_operand.hbm [shape: f32[1,8], index: 6, kind: output, shape index: {}]  }
   0x1   :  { %v32_v0 = vld [vmem:[%s315_s0] sm:$0xff]  ;;  %197 = vmatprep.subr.mxu0 %v238_v2  ;;  %199 = vmatprep.mubr.msk.f32.mxu0 %vm239_vm0, %v238_v2 }
   0x2   :  { %v103_v1 = vld [vmem:[%s318_s3] sm:$0xff] }
   0x3   :  { %11 = vsyncpa [#allocation5], 0  ;;  %198 = vmatpush3.xpose.msra.mxu0 %v32_v0  ;;  %v31_v3 = vld [vmem:[%s316_s1] sm:$0xff]  ;;  %v240_v4 = vmov 0   ;;  %vm28_vm1 = vcmask 57344   ;;  %v241_v6 = vmov -inf  }
   0x4   :  { %209 = vset.pattern.permute.xlu0 %v240_v4  ;;  %v119_v5 = vld [vmem:[%s320_s5] sm:$0xff]  ;;  %29 = vst.msk [vmem:[#allocation2] sm:$0x1] %vm28_vm1, %v241_v6  ;;  %v242_v7 = vmov inf   ;;  %vm132_vm3 = vcmask 64512   ;;  %vm243_vm4 = vmmov 1  }
   0x5   :  { %107 = vperm.xlu0 %209, %v103_v1   ;;  %30 = vst.msk [vmem:[#allocation3] sm:$0x1] %vm28_vm1, %v242_v7  ;;  %v193_v9 = vld [vmem:[%s317_s2] ss:$0 sm:$0xff]  ;;  %s244_s2 = smov [#allocation4]  }
   0x6   :  { %200 = vmatmul.mubr.f32.vlgmr.msra.gmra.mrb[0].mxu0 %v31_v3  ;;  %v194_v10 = vld [vmem:[%s319_s4] ss:$0 sm:$0xff]  ;;  %s185_s4 = sshll.u32 %s244_s2, 4  ;;  %s186_s4 = int_to_ptr.vmem [resolvable:$true] %s185_s4 }
   0x7   :  { %s214_s5 = scalar_lea.vmem %s186_s4, 16  ;;  %s218_s30 = scalar_lea.vmem %s186_s4, 32 }
   0x8   :  { %p215_p0 = scmp.ne.s32.totalorder %s186_s4, %s214_s5  ;;  %p219_p1 = scmp.lt.s32.totalorder %s186_s4, %s186_s4 }
   0x9   :  { %122 = vperm.xlu0 %209, %v119_v5   ;;  %p220_p2 = scmp.lt.s32.totalorder %s218_s30, %s214_s5 }
   0xb   :  { %v130_v31 = vld [vmem:[#allocation2] sm:$0x1]  ;;  %p221_p3 = por %p220_p2, %p219_p1 }
   0xc   :  { %v143_v32 = vld [vmem:[#allocation3] sm:$0x1] }
   0xd   :  { %p222_p4 = pnand %p221_p3, %p215_p0 }
  0x84   :  { %v108_v8 = vpop.permute.xlu0 %107 }
  0x85   :  { %v116_v13 = vadd.f32 %v193_v9, %v108_v8 }
  0x88   :  { %v123_v11 = vpop.permute.xlu0 %122 }
  0x89   :  { %vm128_vm2 = vcmp.eq.s32.totalorder %v123_v11, %v194_v10 }
  0x8a   :  { %vm129_vm5 = vmxor %vm128_vm2, %vm243_vm4 }
  0xd9   :  { %v99_v12 = vpop.f32.mrb[0].mxu0 }
  0xda   :  { %v117_v14 = vmul.f32 2.0, %v99_v12  ;;  %v201_v15 = vpop.f32.mrb[1].mxu0 }
  0xdc   :  { %v118_v16 = vsub.f32 %v116_v13, %v117_v14 }
  0xde   :  { %v131_v17 = vsel %vm128_vm2, %v118_v16, -inf  ;;  %v144_v18 = vsel %vm129_vm5, %v118_v16, inf }
  0xdf   :  { %v133_v19 = vsel %vm132_vm3, %v131_v17, -inf  ;;  %v145_v20 = vsel %vm132_vm3, %v144_v18, inf }
  0xe0   :  { %v134_v21 = vrot.slane %v133_v19, 4  ;;  %v146_v22 = vrot.slane %v145_v20, 4 }
  0xe2   :  { %v135_v23 = vmax.f32 %v133_v19, %v134_v21  ;;  %v147_v24 = vmin.f32 %v145_v20, %v146_v22 }
  0xe4   :  { %v136_v25 = vrot.slane %v135_v23, 2  ;;  %v148_v26 = vrot.slane %v147_v24, 2 }
  0xe6   :  { %v137_v27 = vmax.f32 %v135_v23, %v136_v25  ;;  %v149_v28 = vmin.f32 %v147_v24, %v148_v26 }
  0xe8   :  { %v138_v29 = vrot.slane %v137_v27, 1  ;;  %v150_v30 = vrot.slane %v149_v28, 1 }
  0xea   :  { %v139_v33 = vmax.f32 %v137_v27, %v138_v29  ;;  %v151_v34 = vmin.f32 %v149_v28, %v150_v30 }
  0xec   :  { %v140_v35 = vmax.f32 %v130_v31, %v139_v33  ;;  %v152_v36 = vmin.f32 %v143_v32, %v151_v34 }
  0xee   :  { %142 = vst.msk [vmem:[#allocation2] sm:$0x1] %vm28_vm1, %v140_v35  ;;  %153 = vst.msk [vmem:[#allocation3] sm:$0x1] %vm28_vm1, %v152_v36 }
  0xf5   :  { %v157_v37 = vld [vmem:[#allocation2] sm:$0x1]  ;;  %v166_v38 = vld [vmem:[#allocation3] sm:$0x1] }
  0xf6   :  { %v158_v39 = vmax.f32 %v157_v37, 1e-12  ;;  %v167_v40 = vmax.f32 %v166_v38, 1e-12 }
  0xf8   :  { %210 = vrsqrt.f32 %v158_v39  ;;  %vm161_vm6 = vcmp.eq.f32.partialorder %v158_v39, inf  ;;  %v164_v44 = vand.u32 2147483648, %v158_v39  ;;  %vm163_vm7 = vcmp.eq.f32.partialorder %v158_v39, 0.0 }
  0xf9   :  { %212 = vrsqrt.f32 %v167_v40  ;;  %vm170_vm8 = vcmp.eq.f32.partialorder %v167_v40, inf  ;;  %v173_v47 = vand.u32 2147483648, %v167_v40  ;;  %vm172_vm9 = vcmp.eq.f32.partialorder %v167_v40, 0.0 }
 0x102   :  { %v211_v41 = vpop.eup %210 }
 0x103   :  { %v213_v42 = vpop.eup %212  ;;  %v160_v43 = vmul.f32 %v211_v41, %v158_v39 }
 0x104   :  { %v169_v45 = vmul.f32 %v213_v42, %v167_v40 }
 0x105   :  { %v162_v46 = vsel %vm161_vm6, %v158_v39, %v160_v43 }
 0x106   :  { %v165_v48 = vsel %vm163_vm7, %v164_v44, %v162_v46  ;;  %v171_v49 = vsel %vm170_vm8, %v167_v40, %v169_v45 }
 0x107   :  { %v174_v50 = vsel %vm172_vm9, %v173_v47, %v171_v49 }
 0x108   :  { %v175_v51 = vsub.f32 %v165_v48, %v174_v50 }
 0x10a   :  { %v176_v52 = vadd.f32 0.3, %v175_v51 }
 0x10c   :  { %v177_v53 = vmax.f32 %v176_v52, 0.0 }
 0x10e   :  { %178 = vst.msk [vmem:[#allocation4] sm:$0x1] %vm28_vm1, %v177_v53 }
 0x10f   :  { %225 = shalt.err (!%p222_p4)
}
 0x110   :  { %s226_s9 = scalar_lea.hbm %s321_s6, 16 }
 0x111   :  { %p227_p5 = scmp.ne.s32.totalorder %s321_s6, %s226_s9  ;;  %p230_p6 = scmp.lt.u32.totalorder %s226_s9, %s321_s6 }
 0x113   :  { %p232_p7 = pnand %p230_p6, %p227_p5 }
 0x115   :  { %235 = shalt.err (!%p232_p7)
}
 0x116   :  { %188 = dma.vmem_to_hbm [thread:$0]  %s186_s4, 16, %s321_s6, [#allocation5]  }
 0x117   :  { %236 = dma.done.wait [#allocation5], 16  }
 0x118   :  { %237 = vsyncadd [#allocation5], 4294967280 }
 0x119   :  { %192 = vsyncpa [#allocation5], 1 }

</bundles_post_ra>
